<compile_context>
chip_gen: v7x
topology: tpu7x:2x2x1
jax: 0.10.0
libtpu: 0.0.40
codegen_flags: <defaults>
</compile_context>

<pallas_src>
import functools

import jax
import jax.numpy as jnp
from jax.experimental import pallas as pl
from jax.experimental.pallas import tpu as pltpu


_LANE = 128
_FUSED_VMEM_BUDGET = 28 << 20      # resident-set threshold for the fused path
_VMEM_CAP = 60 << 20               # stay below v7x's 64 MiB physical VMEM


def _round_up(x, m):
    return ((x + m - 1) // m) * m


# ---------------------------------------------------------------------------
# Kernels
# ---------------------------------------------------------------------------
def _gae_fused_kernel(*refs, num_layers, has_features, xw_first):
    """Whole L-layer forward in one invocation; activations stay on-chip."""
    idx = 0
    a_ref = refs[idx]
    idx += 1
    x_ref = None
    if has_features:
        x_ref = refs[idx]
        idx += 1
    w_refs = refs[idx:idx + num_layers]
    idx += num_layers
    o_ref = refs[idx]

    A = a_ref[...]                                         # bf16 (N, K)
    if has_features:
        X = x_ref[...]                                     # bf16 (N, F)
        if xw_first:
            # Dp < F: (X @ W0^T) first -> N^2*Dp instead of N^2*F FLOPs.
            t = jnp.dot(X, w_refs[0][...], preferred_element_type=jnp.float32)
            out = jnp.dot(A, t.astype(jnp.bfloat16),
                          preferred_element_type=jnp.float32)
        else:
            h = jnp.dot(A, X, preferred_element_type=jnp.float32)
            out = jnp.dot(h.astype(jnp.bfloat16), w_refs[0][...],
                          preferred_element_type=jnp.float32)
    else:
        out = jnp.dot(A, w_refs[0][...], preferred_element_type=jnp.float32)

    for w_ref in w_refs[1:]:
        # TODO(synk): nonzero dropout_pct in training mode not implemented
        # (default dropout_pct=0 / eval mode makes F.dropout the identity).
        h = jnp.dot(A, jnp.maximum(out, 0.0).astype(jnp.bfloat16),
                    preferred_element_type=jnp.float32)
        out = jnp.dot(h.astype(jnp.bfloat16), w_ref[...],
                      preferred_element_type=jnp.float32)

    o_ref[...] = out.astype(o_ref.dtype)


def _gae_layer_kernel(a_ref, h_ref, w_ref, o_ref, *, apply_relu):
    """One GAE layer for a row strip: out_blk = (A_blk @ f(h_full)) @ W."""
    h = h_ref[...]
    if apply_relu:
        h = jnp.maximum(h, 0).astype(jnp.bfloat16)
    t = jnp.dot(a_ref[...], h, preferred_element_type=jnp.float32)
    o_ref[...] = jnp.dot(t.astype(jnp.bfloat16), w_ref[...],
                         preferred_element_type=jnp.float32).astype(o_ref.dtype)


def _gae_layer0_nofeat_kernel(a_ref, w_ref, o_ref):
    """Layer 0 without node features: out_blk = A_blk @ W0 (W0 is [in, out])."""
    o_ref[...] = jnp.dot(a_ref[...], w_ref[...],
                         preferred_element_type=jnp.float32).astype(o_ref.dtype)


# ---------------------------------------------------------------------------
# One-time module-state preparation (analogue of __init__)
# ---------------------------------------------------------------------------
def gae_prepare(A, node_features, weights):
    """Cast A / node_features to bf16 and pad+transpose+cast the weights once.

    weights: list of torch-style Linear weights, each [out_dim, in_dim].
    Returns (A_bf16, X_bf16_or_None, (W0_pad, ...), D).
    """
    A_bf = jnp.asarray(A, jnp.float32).astype(jnp.bfloat16)
    X_bf = None
    if node_features is not None:
        X_bf = jnp.asarray(node_features, jnp.float32).astype(jnp.bfloat16)

    D = int(weights[0].shape[0])
    Dp = _round_up(D, _LANE)
    w_list = []
    for i, W in enumerate(weights):
        W = jnp.asarray(W, jnp.float32)
        out_dim, in_dim = W.shape
        in_p = in_dim if i == 0 else Dp        # layer>=1 in dim padded (zeros)
        Wp = jnp.zeros((in_p, Dp), jnp.float32)
        Wp = Wp.at[:in_dim, :out_dim].set(W.T)  # [in, out], K-major for the MXU
        w_list.append(Wp.astype(jnp.bfloat16))
    return (A_bf, X_bf, tuple(w_list), D)


# ---------------------------------------------------------------------------
# Forward
# ---------------------------------------------------------------------------
def _call_fused(A_bf, X_bf, w_list, N, K, F, Dp, has_features, resident):
    num_layers = len(w_list)
    xw_first = has_features and (Dp < F)

    ops = [A_bf]
    in_specs = [pl.BlockSpec((N, K), lambda: (0, 0))]
    if has_features:
        ops.append(X_bf)
        in_specs.append(pl.BlockSpec((N, F), lambda: (0, 0)))
    for w in w_list:
        ops.append(w)
        in_specs.append(pl.BlockSpec(w.shape, lambda: (0, 0)))

    # FLOP / byte estimate so XLA schedules neighbors around the custom call.
    if has_features:
        l0_flops = (2 * N * F * Dp + 2 * N * K * Dp) if xw_first \
            else (2 * N * K * F + 2 * N * F * Dp)
    else:
        l0_flops = 2 * N * K * Dp
    flops = l0_flops + (num_layers - 1) * (2 * N * K * Dp + 2 * N * Dp * Dp)
    bytes_accessed = sum(int(o.size) * o.dtype.itemsize for o in ops) + N * Dp * 4
    cost = pl.CostEstimate(flops=flops, transcendentals=0,
                           bytes_accessed=bytes_accessed)

    vmem_limit = int(min(max(2 * resident + (4 << 20), 16 << 20), _VMEM_CAP))
    kernel = functools.partial(_gae_fused_kernel, num_layers=num_layers,
                               has_features=has_features, xw_first=xw_first)
    return pl.pallas_call(
        kernel,
        out_shape=jax.ShapeDtypeStruct((N, Dp), jnp.float32),
        in_specs=in_specs,
        out_specs=pl.BlockSpec((N, Dp), lambda: (0, 0)),
        compiler_params=pltpu.CompilerParams(vmem_limit_bytes=vmem_limit),
        cost_estimate=cost,
    )(*ops)


def _pick_row_tile(N):
    for tm in (256, 128, 64, 32, 16, 8):
        if N % tm == 0:
            return tm
    return N  # single full-row block (full-dim block is exempt from (8,128))


def _call_layered(A_bf, X_bf, w_list, N, K, F, Dp, has_features):
    """Per-layer pallas_calls with a 'parallel' row grid (v7x megacore)."""
    # TODO(synk): for graphs where a (tm, K) strip of A or the (N, Dp)
    # activation no longer fits VMEM, additionally tile the contraction (K)
    # axis (trailing "arbitrary" grid axis + f32 VMEM accumulator scratch).
    tm = _pick_row_tile(N)
    nblk = N // tm
    grid = (nblk,)
    num_layers = len(w_list)

    a_spec = pl.BlockSpec((tm, K), lambda i: (i, 0))
    out_spec = pl.BlockSpec((tm, Dp), lambda i: (i, 0))

    def full_spec(arr):
        return pl.BlockSpec(arr.shape, lambda i: (0, 0))

    def compiler_params(h_bytes, w_bytes, out_itemsize):
        step = (2 * tm * K * 2                     # double-buffered A strip
                + h_bytes + w_bytes
                + 2 * tm * Dp * out_itemsize
                + 2 * tm * max(Dp, K) * 4)         # f32 temporaries
        vl = int(min(max(2 * step + (4 << 20), 16 << 20), _VMEM_CAP))
        return pltpu.CompilerParams(dimension_semantics=("parallel",),
                                    vmem_limit_bytes=vl)

    h = X_bf  # None when there are no node features
    out = None
    for l, w in enumerate(w_list):
        last = (l == num_layers - 1)
        out_dtype = jnp.float32 if last else jnp.bfloat16
        out_itemsize = 4 if last else 2
        out_shape = jax.ShapeDtypeStruct((N, Dp), out_dtype)
        w_bytes = int(w.size) * 2
        if l == 0 and not has_features:
            out = pl.pallas_call(
                _gae_layer0_nofeat_kernel,
                out_shape=out_shape, grid=grid,
                in_specs=[a_spec, full_spec(w)],
                out_specs=out_spec,
                compiler_params=compiler_params(0, w_bytes, out_itemsize),
            )(A_bf, w)
        else:
            kern = functools.partial(_gae_layer_kernel, apply_relu=(l > 0))
            h_bytes = int(h.size) * 2
            out = pl.pallas_call(
                kern,
                out_shape=out_shape, grid=grid,
                in_specs=[a_spec, full_spec(h), full_spec(w)],
                out_specs=out_spec,
                compiler_params=compiler_params(h_bytes, w_bytes, out_itemsize),
            )(A_bf, h, w)
        h = out
    return out


def _forward_impl(A_bf, X_bf, w_list, D, force_layered):
    N, K = A_bf.shape
    has_features = X_bf is not None
    Dp = w_list[0].shape[1]
    F = X_bf.shape[1] if has_features else K

    # Resident set of the fully fused plan (bf16 operands + f32 temporaries).
    resident = (N * K * 2
                + (N * F * 2 if has_features else 0)
                + sum(int(w.size) * 2 for w in w_list)
                + N * Dp * 4
                + 2 * N * max(Dp, F) * 4)
    use_fused = (not force_layered) and resident <= _FUSED_VMEM_BUDGET

    if use_fused:
        out_p = _call_fused(A_bf, X_bf, w_list, N, K, F, Dp,
                            has_features, resident)
    else:
        out_p = _call_layered(A_bf, X_bf, w_list, N, K, F, Dp, has_features)
    return out_p[:, :D]


_gae_forward_jit = jax.jit(_forward_impl, static_argnums=(3, 4))


def gae_forward(params, node_idx=None, force_layered=False):
    """Pallas implementation of GraphAutoEncoder.forward.

    params: output of gae_prepare(A, node_features, weights).
    """
    A_bf, X_bf, w_list, D = params
    out = _gae_forward_jit(A_bf, X_bf, w_list, int(D), bool(force_layered))
    if node_idx is not None:
        out = out[node_idx]
    return out


def _xavier_uniform(key, out_dim, in_dim):
    # torch.nn.init.xavier_uniform_ on a [out, in] Linear weight.
    bound = (6.0 / (in_dim + out_dim)) ** 0.5
    return jax.random.uniform(
        key, (out_dim, in_dim), minval=-bound, maxval=bound, dtype=jnp.float32)


# ---------------------------------------------------------------------------
# Self-test
# ---------------------------------------------------------------------------
if __name__ == "__main__":
    def reference(A, X, weights):
        # f32 reference from bf16-rounded inputs (same rounding the kernel's
        # MXU inputs see); intermediates stay f32.
        Ar = A.astype(jnp.bfloat16).astype(jnp.float32)
        Wr = [w.astype(jnp.bfloat16).astype(jnp.float32) for w in weights]
        if X is not None:
            h = Ar @ X.astype(jnp.bfloat16).astype(jnp.float32)
        else:
            h = Ar
        out = h @ Wr[0].T
        for W in Wr[1:]:
            out = (Ar @ jnp.maximum(out, 0.0)) @ W.T
        return out

    def check(out, ref, name, rtol=2e-2):
        assert out.shape == ref.shape, (name, out.shape, ref.shape)
        err = float(jnp.max(jnp.abs(out - ref)))
        scale = float(jnp.max(jnp.abs(ref))) + 1e-6
        assert err <= rtol * scale, (name, err, scale)

    # ---- small fused-path test (N=16, F=8, D=32, L=3) ----
    key = jax.random.PRNGKey(0)
    N, F, D, L = 16, 8, 32, 3
    k_a, k_x, *k_w = jax.random.split(key, 2 + L)
    A = jax.random.uniform(k_a, (N, N), dtype=jnp.float32)
    X = jax.random.uniform(k_x, (N, F), dtype=jnp.float32)
    weights = [_xavier_uniform(k_w[i], D, F if i == 0 else D) for i in range(L)]

    params = gae_prepare(A, X, weights)
    out = jax.block_until_ready(gae_forward(params))
    ref = reference(A, X, weights)
    assert out.shape == (N, D), out.shape
    check(out, ref, "fused")

    node_idx = jnp.array([0, 3, 7])
    out_idx = jax.block_until_ready(gae_forward(params, node_idx=node_idx))
    check(out_idx, ref[node_idx], "node_idx")

    # ---- layer-0 order branch (Dp < F => X @ W0^T first) ----
    N2, F2, D2, L2 = 16, 256, 32, 2
    k_a2, k_x2, *k_w2 = jax.random.split(jax.random.PRNGKey(1), 2 + L2)
    A2 = jax.random.uniform(k_a2, (N2, N2), dtype=jnp.float32)
    X2 = jax.random.uniform(k_x2, (N2, F2), dtype=jnp.float32)
    weights2 = [_xavier_uniform(k_w2[i], D2, F2 if i == 0 else D2)
                for i in range(L2)]
    params2 = gae_prepare(A2, X2, weights2)
    out2 = jax.block_until_ready(gae_forward(params2))
    check(out2, reference(A2, X2, weights2), "xw_first")

    # ---- layered path (per-layer calls, 'parallel' row grid), forced ----
    N3, F3, D3, L3 = 512, 8, 32, 3
    k_a3, k_x3, *k_w3 = jax.random.split(jax.random.PRNGKey(2), 2 + L3)
    A3 = jax.random.uniform(k_a3, (N3, N3), dtype=jnp.float32)
    X3 = jax.random.uniform(k_x3, (N3, F3), dtype=jnp.float32)
    weights3 = [_xavier_uniform(k_w3[i], D3, F3 if i == 0 else D3)
                for i in range(L3)]
    params3 = gae_prepare(A3, X3, weights3)
    out3 = jax.block_until_ready(gae_forward(params3, force_layered=True))
    check(out3, reference(A3, X3, weights3), "layered", rtol=5e-2)

    print("KERNEL_OK")
</pallas_src>

<mosaic_0001>
module attributes {stable_mosaic.version = 11 : i64} {
  func.func @_gae_fused_kernel(%arg0: memref<16x16xbf16, #tpu.memory_space<vmem>>, %arg1: memref<16x8xbf16, #tpu.memory_space<vmem>>, %arg2: memref<8x128xbf16, #tpu.memory_space<vmem>>, %arg3: memref<128x128xbf16, #tpu.memory_space<vmem>>, %arg4: memref<128x128xbf16, #tpu.memory_space<vmem>>, %arg5: memref<16x128xf32, #tpu.memory_space<vmem>>) attributes {dimension_semantics = [], scalar_prefetch = 0 : i64, scratch_operands = 0 : i64, tpu.core_type = #tpu.core_type<tc>} {
    %c0 = arith.constant 0 : index
    %c0_0 = arith.constant 0 : index
    %0 = vector.load %arg0[%c0, %c0_0] : memref<16x16xbf16, #tpu.memory_space<vmem>>, vector<16x16xbf16>
    %c0_1 = arith.constant 0 : index
    %c0_2 = arith.constant 0 : index
    %1 = vector.load %arg1[%c0_1, %c0_2] : memref<16x8xbf16, #tpu.memory_space<vmem>>, vector<16x8xbf16>
    %cst = arith.constant dense<0.000000e+00> : vector<16x8xf32>
    %2 = tpu.matmul %0, %1, %cst {dimension_numbers = #tpu.dot_dimension_numbers<[1], [0], [0], [1], [0, 0, 1, 1], [], []>} : vector<16x16xbf16>, vector<16x8xbf16>, vector<16x8xf32> -> vector<16x8xf32>
    %3 = arith.truncf %2 : vector<16x8xf32> to vector<16x8xbf16>
    %c0_3 = arith.constant 0 : index
    %c0_4 = arith.constant 0 : index
    %4 = vector.load %arg2[%c0_3, %c0_4] : memref<8x128xbf16, #tpu.memory_space<vmem>>, vector<8x128xbf16>
    %cst_5 = arith.constant dense<0.000000e+00> : vector<16x128xf32>
    %5 = tpu.matmul %3, %4, %cst_5 {dimension_numbers = #tpu.dot_dimension_numbers<[1], [0], [0], [1], [0, 0, 1, 1], [], []>} : vector<16x8xbf16>, vector<8x128xbf16>, vector<16x128xf32> -> vector<16x128xf32>
    %cst_6 = arith.constant 0.000000e+00 : f32
    %6 = vector.broadcast %cst_6 : f32 to vector<16x128xf32>
    %7 = arith.maximumf %5, %6 : vector<16x128xf32>
    %8 = arith.truncf %7 : vector<16x128xf32> to vector<16x128xbf16>
    %cst_7 = arith.constant dense<0.000000e+00> : vector<16x128xf32>
    %9 = tpu.matmul %0, %8, %cst_7 {dimension_numbers = #tpu.dot_dimension_numbers<[1], [0], [0], [1], [0, 0, 1, 1], [], []>} : vector<16x16xbf16>, vector<16x128xbf16>, vector<16x128xf32> -> vector<16x128xf32>
    %10 = arith.truncf %9 : vector<16x128xf32> to vector<16x128xbf16>
    %c0_8 = arith.constant 0 : index
    %c0_9 = arith.constant 0 : index
    %11 = vector.load %arg3[%c0_8, %c0_9] : memref<128x128xbf16, #tpu.memory_space<vmem>>, vector<128x128xbf16>
    %cst_10 = arith.constant dense<0.000000e+00> : vector<16x128xf32>
    %12 = tpu.matmul %10, %11, %cst_10 {dimension_numbers = #tpu.dot_dimension_numbers<[1], [0], [0], [1], [0, 0, 1, 1], [], []>} : vector<16x128xbf16>, vector<128x128xbf16>, vector<16x128xf32> -> vector<16x128xf32>
    %cst_11 = arith.constant 0.000000e+00 : f32
    %13 = vector.broadcast %cst_11 : f32 to vector<16x128xf32>
    %14 = arith.maximumf %12, %13 : vector<16x128xf32>
    %15 = arith.truncf %14 : vector<16x128xf32> to vector<16x128xbf16>
    %cst_12 = arith.constant dense<0.000000e+00> : vector<16x128xf32>
    %16 = tpu.matmul %0, %15, %cst_12 {dimension_numbers = #tpu.dot_dimension_numbers<[1], [0], [0], [1], [0, 0, 1, 1], [], []>} : vector<16x16xbf16>, vector<16x128xbf16>, vector<16x128xf32> -> vector<16x128xf32>
    %17 = arith.truncf %16 : vector<16x128xf32> to vector<16x128xbf16>
    %c0_13 = arith.constant 0 : index
    %c0_14 = arith.constant 0 : index
    %18 = vector.load %arg4[%c0_13, %c0_14] : memref<128x128xbf16, #tpu.memory_space<vmem>>, vector<128x128xbf16>
    %cst_15 = arith.constant dense<0.000000e+00> : vector<16x128xf32>
    %19 = tpu.matmul %17, %18, %cst_15 {dimension_numbers = #tpu.dot_dimension_numbers<[1], [0], [0], [1], [0, 0, 1, 1], [], []>} : vector<16x128xbf16>, vector<128x128xbf16>, vector<16x128xf32> -> vector<16x128xf32>
    %c0_16 = arith.constant 0 : index
    %c0_17 = arith.constant 0 : index
    %20 = vector.load %arg5[%c0_16, %c0_17] : memref<16x128xf32, #tpu.memory_space<vmem>>, vector<16x128xf32>
    tpu.vector_store %arg5[%c0_16, %c0_17], %19 {strides = array<i32>} : memref<16x128xf32, #tpu.memory_space<vmem>>, vector<16x128xf32>,
    return
  }
}

</mosaic_0001>

<bundles_post_ra>
// kernel: _forward_impl.1
= control target key start
LH: loop header
LB: loop body
LE: loop exit
PB: predicated region body
PF: predicated region fallthrough
CT: control target
= control target key end

     0   :  { %10 = vsyncpa [#allocation3], 0  ;;  %s816_s0 = inlined_call_operand.vmem [shape: bf16[16,16], index: 0, kind: input, shape index: {}]   ;;  %s817_s1 = inlined_call_operand.vmem [shape: bf16[16,8], index: 1, kind: input, shape index: {}]   ;;  %s818_s2 = inlined_call_operand.vmem [shape: bf16[8,128], index: 2, kind: input, shape index: {}]   ;;  %s819_s3 = inlined_call_operand.hbm [shape: bf16[128,128], index: 3, kind: input, shape index: {}]   ;;  %s820_s4 = inlined_call_operand.hbm [shape: bf16[128,128], index: 4, kind: input, shape index: {}]   ;;  %s821_s5 = inlined_call_operand.hbm [shape: f32[16,128], index: 5, kind: output, shape index: {}]  }
   0x1   :  { %11 = vsyncpa [#allocation6], 0 }
   0x2   :  { %12 = vsyncpa [#allocation4], 0  ;;  %s692_s18 = smov [#allocation2]   ;;  %s620_s22 = scalar_lea.hbm %s819_s3, 1024 }
   0x3   :  { %s24_s19 = sshll.u32 %s692_s18, 4  ;;  %p621_p0 = scmp.ne.s32.totalorder %s819_s3, %s620_s22  ;;  %s25_s19 = int_to_ptr.vmem [resolvable:$true] %s24_s19 }
   0x4   :  { %p624_p1 = scmp.lt.u32.totalorder %s620_s22, %s819_s3 }
   0x6   :  { %p626_p2 = pnand %p624_p1, %p621_p0 }
   0x8   :  { %629 = shalt.err (!%p626_p2)
}
   0x9   :  { %s630_s27 = scalar_lea.vmem %s25_s19, 1024  ;;  %p635_p4 = scmp.lt.s32.totalorder %s25_s19, %s25_s19 }
   0xa   :  { %p631_p3 = scmp.ne.s32.totalorder %s25_s19, %s630_s27  ;;  %p636_p5 = scmp.lt.s32.totalorder %s630_s27, %s630_s27 }
   0xc   :  { %p637_p6 = por %p636_p5, %p635_p4 }
   0xe   :  { %p638_p7 = pnand %p637_p6, %p631_p3 }
  0x10   :  { %641 = shalt.err (!%p638_p7)
}
  0x11   :  { %s693_s28 = smov 64   ;;  %s694_s29 = smov 4  }
  0x12   :  { %30 = dma.hbm_to_vmem [thread:$0]  %s819_s3, 1024, %s25_s19, [#allocation3], %s693_s28, %s693_s28, %s694_s29  }
  0x13   :  { %s695_s7 = smov [#allocation5]   ;;  %s642_s11 = scalar_lea.hbm %s820_s4, 1024 }
  0x14   :  { %s36_s8 = sshll.u32 %s695_s7, 4  ;;  %p643_p8 = scmp.ne.s32.totalorder %s820_s4, %s642_s11  ;;  %s37_s8 = int_to_ptr.vmem [resolvable:$true] %s36_s8 }
  0x15   :  { %p646_p9 = scmp.lt.u32.totalorder %s642_s11, %s820_s4 }
  0x17   :  { %p648_p10 = pnand %p646_p9, %p643_p8 }
  0x19   :  { %651 = shalt.err (!%p648_p10)
}
  0x1a   :  { %s652_s16 = scalar_lea.vmem %s37_s8, 1024  ;;  %p657_p12 = scmp.lt.s32.totalorder %s37_s8, %s37_s8 }
  0x1b   :  { %p653_p11 = scmp.ne.s32.totalorder %s37_s8, %s652_s16  ;;  %p658_p13 = scmp.lt.s32.totalorder %s652_s16, %s652_s16 }
  0x1d   :  { %p659_p0 = por %p658_p13, %p657_p12 }
  0x1f   :  { %p660_p1 = pnand %p659_p0, %p653_p11 }
  0x21   :  { %663 = shalt.err (!%p660_p1)
}
  0x22   :  { %42 = dma.hbm_to_vmem [thread:$0]  %s820_s4, 1024, %s37_s8, [#allocation6], %s693_s28, %s693_s28, %s694_s29  }
  0x23   :  { %686 = dma.done.wait [#allocation3], 1024  }
  0x24   :  { %687 = vsyncadd [#allocation3], 4294966272 }
  0x25   :  { %688 = dma.done.wait [#allocation6], 1024  }
  0x26   :  { %689 = vsyncadd [#allocation6], 4294966272  ;;  %v696_v0 = vmov 0.0   ;;  %vm697_vm0 = vmmov 0   ;;  %v602_v1 = vld [vmem:[%s817_s1] sm:$0xff]   ;;  %vm65_vm1 = vcmask 130048  }
  0x27   :  { %529 = vmatprep.subr.bf16.mxu1 %v696_v0  ;;  %531 = vmatprep.mubr.msk.bf16.mxu1 %vm697_vm0, %v696_v0  ;;  %v767_v2 = vld [vmem:[%s816_s0] sm:$0xff]   ;;  %vm116_vm2 = vcmask 1043456   ;;  %vm112_vm3 = vcmask 64512   ;;  %v605_v11 = vld [vmem:[#allocation2 + $0x8] sm:$0xff]   ;;  %v606_v12 = vld [vmem:[#allocation2 + $0x10] sm:$0xff]   ;;  %s698_s0 = smov [#allocation7]  }
  0x28   :  { %541 = vmatprep.subr.bf16.mxu0 %v696_v0  ;;  %543 = vmatprep.mubr.msk.bf16.mxu0 %vm697_vm0, %v696_v0  ;;  %v111_v3 = vld [vmem:[%s818_s2] sm:$0xf]  ;;  %v607_v13 = vld [vmem:[#allocation2 + $0x18] sm:$0xff]   ;;  %v609_v15 = vld [vmem:[#allocation2 + $0x28] sm:$0xff]   ;;  %s468_s1 = sshll.u32 %s698_s0, 4  ;;  %s469_s1 = int_to_ptr.vmem [resolvable:$true] %s468_s1 }
  0x29   :  { %530 = vmatpush3.bf16.msra.mxu1 %v602_v1  ;;  %v118_v4 = vsel %vm116_vm2, %v111_v3, 0  ;;  %v604_v10 = vld [vmem:[#allocation2] sm:$0xff]   ;;  %v610_v16 = vld [vmem:[#allocation2 + $0x30] sm:$0xff]   ;;  %v611_v24 = vld [vmem:[#allocation2 + $0x38] sm:$0xff]   ;;  %s664_s2 = scalar_lea.vmem %s469_s1, 256  ;;  %p669_p3 = scmp.lt.s32.totalorder %s469_s1, %s469_s1 }
  0x2a   :  { %535 = vmatprep.subr.bf16.mxu1 %v696_v0  ;;  %v608_v14 = vld [vmem:[#allocation2 + $0x20] sm:$0xff]   ;;  %v613_v38 = vld [vmem:[#allocation5 + $0x8] sm:$0xff]   ;;  %v614_v39 = vld [vmem:[#allocation5 + $0x10] sm:$0xff]   ;;  %p665_p2 = scmp.ne.s32.totalorder %s469_s1, %s664_s2  ;;  %p670_p4 = scmp.lt.s32.totalorder %s664_s2, %s664_s2 }
  0x2b   :  { %v612_v37 = vld [vmem:[#allocation5] sm:$0xff]   ;;  %v615_v40 = vld [vmem:[#allocation5 + $0x18] sm:$0xff]   ;;  %v617_v42 = vld [vmem:[#allocation5 + $0x28] sm:$0xff]  }
  0x2c   :  { %532 = vmatmul.mubr.msk.bf16.vlgmr.msra.gmra.mrb[0].mxu1 %vm65_vm1, %v767_v2  ;;  %v616_v41 = vld [vmem:[#allocation5 + $0x20] sm:$0xff]   ;;  %v618_v43 = vld [vmem:[#allocation5 + $0x30] sm:$0xff]   ;;  %v619_v44 = vld [vmem:[#allocation5 + $0x38] sm:$0xff]   ;;  %p671_p5 = por %p670_p4, %p669_p3 }
  0x2d   :  { %537 = vmatprep.mubr.msk.bf16.mxu1 %vm697_vm0, %v696_v0  ;;  %536 = vmatpush3.bf16.msra.mxu1 %v118_v4 }
  0x2e   :  { %547 = vmatprep.subr.bf16.mxu1 %v696_v0  ;;  %p672_p6 = pnand %p671_p5, %p665_p2 }
  0xff   :  { %v103_v5 = vpop.f32.mrb[0].mxu1 }
 0x100   :  { %v533_v6 = vpop.f32.mrb[1].mxu1 }
 0x101   :  { %v106_v7 = vpop.f32.mrb[2].mxu1 }
 0x102   :  { %v110_v8 = vpack.c.bf16 %v106_v7, %v103_v5  ;;  %v534_v9 = vpop.f32.mrb[3].mxu1 }
 0x104   :  { %538 = vmatmul.mubr.msk.bf16.vlgmr.msra.gmra.mrb[4].mxu1 %vm112_vm3, %v110_v8 }
 0x105   :  { %563 = vmatprep.mubr.msk.bf16.mxu1 %vm697_vm0, %v696_v0  ;;  %548 = vmatpush3.bf16.msra.mxu1 %v604_v10 }
 0x106   :  { %549 = vmatprep.subr.bf16.mxu1 %v696_v0 }
 0x109   :  { %550 = vmatpush3.bf16.msra.mxu1 %v605_v11 }
 0x10a   :  { %551 = vmatprep.subr.bf16.mxu1 %v696_v0 }
 0x10d   :  { %552 = vmatpush3.bf16.msra.mxu1 %v606_v12 }
 0x10e   :  { %553 = vmatprep.subr.bf16.mxu1 %v696_v0 }
 0x111   :  { %554 = vmatpush3.bf16.msra.mxu1 %v607_v13 }
 0x112   :  { %555 = vmatprep.subr.bf16.mxu1 %v696_v0 }
 0x115   :  { %556 = vmatpush3.bf16.msra.mxu1 %v608_v14 }
 0x116   :  { %557 = vmatprep.subr.bf16.mxu1 %v696_v0 }
 0x119   :  { %558 = vmatpush3.bf16.msra.mxu1 %v609_v15 }
 0x11a   :  { %559 = vmatprep.subr.bf16.mxu1 %v696_v0 }
 0x11d   :  { %560 = vmatpush3.bf16.msra.mxu1 %v610_v16 }
 0x11e   :  { %561 = vmatprep.subr.bf16.mxu1 %v696_v0 }
 0x121   :  { %562 = vmatpush3.bf16.msra.mxu1 %v611_v24 }
 0x1d7   :  { %v154_v17 = vpop.f32.mrb[4].mxu1 }
 0x1d8   :  { %v539_v18 = vpop.f32.mrb[5].mxu1  ;;  %v161_v20 = vmax.f32 %v154_v17, 0.0 }
 0x1d9   :  { %v157_v19 = vpop.f32.mrb[6].mxu1 }
 0x1da   :  { %v162_v21 = vmax.f32 %v157_v19, 0.0  ;;  %v540_v22 = vpop.f32.mrb[7].mxu1 }
 0x1dc   :  { %v163_v23 = vpack.c.bf16 %v162_v21, %v161_v20 }
 0x1de   :  { %542 = vmatpush3.bf16.msra.mxu0 %v163_v23 }
 0x1df   :  { %567 = vmatprep.subr.bf16.mxu0 %v696_v0 }
 0x1e1   :  { %544 = vmatmul.mubr.msk.bf16.vlgmr.msra.gmra.mrb[0].mxu0 %vm65_vm1, %v767_v2 }
 0x1e2   :  { %569 = vmatprep.mubr.msk.bf16.mxu0 %vm697_vm0, %v696_v0 }
 0x2b4   :  { %v198_v25 = vpop.f32.mrb[0].mxu0 }
 0x2b5   :  { %v545_v26 = vpop.f32.mrb[1].mxu0 }
 0x2b6   :  { %v201_v27 = vpop.f32.mrb[2].mxu0 }
 0x2b7   :  { %v205_v28 = vpack.c.bf16 %v201_v27, %v198_v25  ;;  %v546_v29 = vpop.f32.mrb[3].mxu0 }
 0x2b9   :  { %564 = vmatmul.mubr.bf16.vlgmr.msra.gmra.mrb[8].mxu1 %v205_v28 }
 0x38c   :  { %v304_v30 = vpop.f32.mrb[8].mxu1 }
 0x38d   :  { %v565_v31 = vpop.f32.mrb[9].mxu1  ;;  %v311_v33 = vmax.f32 %v304_v30, 0.0 }
 0x38e   :  { %v307_v32 = vpop.f32.mrb[10].mxu1 }
 0x38f   :  { %v312_v34 = vmax.f32 %v307_v32, 0.0  ;;  %v566_v35 = vpop.f32.mrb[11].mxu1 }
 0x391   :  { %v313_v36 = vpack.c.bf16 %v312_v34, %v311_v33 }
 0x393   :  { %568 = vmatpush3.bf16.msra.mxu0 %v313_v36 }
 0x394   :  { %573 = vmatprep.subr.bf16.mxu0 %v696_v0 }
 0x396   :  { %570 = vmatmul.mubr.msk.bf16.vlgmr.msra.gmra.mrb[4].mxu0 %vm65_vm1, %v767_v2 }
 0x397   :  { %574 = vmatpush3.bf16.msra.mxu0 %v612_v37  ;;  %589 = vmatprep.mubr.msk.bf16.mxu0 %vm697_vm0, %v696_v0 }
 0x398   :  { %575 = vmatprep.subr.bf16.mxu0 %v696_v0 }
 0x39b   :  { %576 = vmatpush3.bf16.msra.mxu0 %v613_v38 }
 0x39c   :  { %577 = vmatprep.subr.bf16.mxu0 %v696_v0 }
 0x39f   :  { %578 = vmatpush3.bf16.msra.mxu0 %v614_v39 }
 0x3a0   :  { %579 = vmatprep.subr.bf16.mxu0 %v696_v0 }
 0x3a3   :  { %580 = vmatpush3.bf16.msra.mxu0 %v615_v40 }
 0x3a4   :  { %581 = vmatprep.subr.bf16.mxu0 %v696_v0 }
 0x3a7   :  { %582 = vmatpush3.bf16.msra.mxu0 %v616_v41 }
 0x3a8   :  { %583 = vmatprep.subr.bf16.mxu0 %v696_v0 }
 0x3ab   :  { %584 = vmatpush3.bf16.msra.mxu0 %v617_v42 }
 0x3ac   :  { %585 = vmatprep.subr.bf16.mxu0 %v696_v0 }
 0x3af   :  { %586 = vmatpush3.bf16.msra.mxu0 %v618_v43 }
 0x3b0   :  { %587 = vmatprep.subr.bf16.mxu0 %v696_v0 }
 0x3b3   :  { %588 = vmatpush3.bf16.msra.mxu0 %v619_v44 }
 0x469   :  { %v348_v45 = vpop.f32.mrb[4].mxu0 }
 0x46a   :  { %v571_v46 = vpop.f32.mrb[5].mxu0 }
 0x46b   :  { %v351_v47 = vpop.f32.mrb[6].mxu0 }
 0x46c   :  { %v355_v48 = vpack.c.bf16 %v351_v47, %v348_v45  ;;  %v572_v49 = vpop.f32.mrb[7].mxu0 }
 0x46e   :  { %590 = vmatmul.mubr.bf16.vlgmr.msra.gmra.mrb[8].mxu0 %v355_v48 }
 0x541   :  { %v454_v50 = vpop.f32.mrb[8].mxu0 }
 0x542   :  { %461 = vst [vmem:[#allocation7] sm:$0xff] %v454_v50  ;;  %v591_v51 = vpop.f32.mrb[9].mxu0 }
 0x543   :  { %v457_v52 = vpop.f32.mrb[10].mxu0 }
 0x544   :  { %462 = vst [vmem:[#allocation7 + $0x8] sm:$0xff] %v457_v52  ;;  %v592_v53 = vpop.f32.mrb[11].mxu0 }
 0x545   :  { %675 = shalt.err (!%p672_p6)
}
 0x546   :  { %s676_s25 = scalar_lea.hbm %s821_s5, 256 }
 0x547   :  { %p677_p7 = scmp.ne.s32.totalorder %s821_s5, %s676_s25  ;;  %p680_p8 = scmp.lt.u32.totalorder %s676_s25, %s821_s5 }
 0x549   :  { %p682_p9 = pnand %p680_p8, %p677_p7 }
 0x54b   :  { %685 = shalt.err (!%p682_p9)
}
 0x54c   :  { %s699_s30 = smov 128   ;;  %s700_s6 = smov 8  }
 0x54d   :  { %474 = dma.vmem_to_hbm [thread:$0]  %s469_s1, 256, %s821_s5, [#allocation4], %s699_s30, %s699_s30, %s700_s6  }
 0x54e   :  { %690 = dma.done.wait [#allocation4], 256  }
 0x54f   :  { %691 = vsyncadd [#allocation4], 4294967040 }
 0x550   :  { %478 = vsyncpa [#allocation3], 1 }
 0x551   :  { %479 = vsyncpa [#allocation6], 1 }
 0x552   :  { %480 = vsyncpa [#allocation4], 1 }

</bundles_post_ra>
